<compile_context>
chip_gen: v7x
topology: tpu7x:2x2x1
jax: 0.10.0
libtpu: 0.0.40
codegen_flags: <defaults>
</compile_context>

<pallas_src>
import functools

import jax
import jax.numpy as jnp
from jax.experimental import pallas as pl
from jax.experimental.pallas import tpu as pltpu


def _round_up(x, m):
    return ((x + m - 1) // m) * m


# ----------------------------- Pallas kernel --------------------------------
def _patch_proj_kernel(x_ref, w_ref, b_ref, o_ref):
    # x_ref: (tm, K)  w_ref: (K, E_pad)  b_ref: (1, E_pad)  o_ref: (tm, E_pad)
    acc = jnp.dot(x_ref[...], w_ref[...], preferred_element_type=jnp.float32)
    o_ref[...] = (acc + b_ref[...]).astype(o_ref.dtype)


def _patch_proj(x_patches, w_flat, bias, *, tm=1024):
    """x_patches: (M, K) f32, w_flat: (K, E) f32, bias: (E,) f32 -> (M, E) f32."""
    M, K = x_patches.shape
    E = w_flat.shape[1]

    # Lane-dense output: pad embed dim to a multiple of 128.
    LANE = 128
    E_pad = _round_up(E, LANE)
    if E_pad != E:
        w_flat = jnp.pad(w_flat, ((0, 0), (0, E_pad - E)))
        bias = jnp.pad(bias, ((0, E_pad - E),))
    bias2d = bias.reshape(1, E_pad)

    # Big M tiles (mem-bound kernel), but never larger than the (padded) problem.
    tm = min(tm, _round_up(M, 8))
    M_pad = _round_up(M, tm)
    if M_pad != M:
        x_patches = jnp.pad(x_patches, ((0, M_pad - M), (0, 0)))

    out = pl.pallas_call(
        _patch_proj_kernel,
        out_shape=jax.ShapeDtypeStruct((M_pad, E_pad), x_patches.dtype),
        grid_spec=pltpu.PrefetchScalarGridSpec(
            num_scalar_prefetch=0,
            grid=(M_pad // tm,),
            in_specs=[
                pl.BlockSpec((tm, K), lambda i: (i, 0)),
                # Constant index maps: W and bias stay resident, DMA'd once.
                pl.BlockSpec((K, E_pad), lambda i: (0, 0)),
                pl.BlockSpec((1, E_pad), lambda i: (0, 0)),
            ],
            out_specs=pl.BlockSpec((tm, E_pad), lambda i: (i, 0)),
        ),
        compiler_params=pltpu.CompilerParams(
            dimension_semantics=("parallel",)),
    )(x_patches, w_flat, bias2d)

    return out[:M, :E]


# ----------------------------- jitted forward --------------------------------
@functools.partial(jax.jit, static_argnames=("patch_size", "embed_dim", "tm"))
def _patch_embed3d_forward(x, weight, bias, *, patch_size, embed_dim, tm=1024):
    # x: (N, C, D, H, W) float32, weight: (E, C, pd, ph, pw), bias: (E,)
    pd, ph, pw = patch_size
    N, C, D, H, W = x.shape

    # Right-side zero padding, exactly like the torch F.pad calls.
    pad_w = (-W) % pw
    pad_h = (-H) % ph
    pad_d = (-D) % pd
    if pad_w or pad_h or pad_d:
        x = jnp.pad(x, ((0, 0), (0, 0), (0, pad_d), (0, pad_h), (0, pad_w)))
    D2, H2, W2 = D + pad_d, H + pad_h, W + pad_w
    Dp, Hp, Wp = D2 // pd, H2 // ph, W2 // pw

    # im2col for non-overlapping 3D patches (fused into one XLA pass under jit):
    # (N,C,D,H,W) -> (N, C, Dp, pd, Hp, ph, Wp, pw)
    xp = x.reshape(N, C, Dp, pd, Hp, ph, Wp, pw)
    # -> (N, Dp, Hp, Wp, C, pd, ph, pw); reduction order (C, pd, ph, pw)
    # matches the Conv3d weight flattening.
    xp = jnp.transpose(xp, (0, 2, 4, 6, 1, 3, 5, 7))
    K = C * pd * ph * pw
    M = N * Dp * Hp * Wp
    x_patches = xp.reshape(M, K)

    # (E, C, pd, ph, pw) -> (K, E)
    w_flat = weight.reshape(embed_dim, K).T

    # TODO(synk): optional bf16 input cast (f32 accumulate) would ~halve HBM
    # read bytes on v6e/v7x; left in f32 to keep numerics identical.
    out = _patch_proj(x_patches, w_flat, bias, tm=tm)          # (M, E)

    # (M, E) -> (N, Dp, Hp, Wp, E) -> (N, E, Dp, Hp, Wp)  (matches Conv3d output)
    out = out.reshape(N, Dp, Hp, Wp, embed_dim)
    out = jnp.transpose(out, (0, 4, 1, 2, 3))
    return out


# ----------------------------- Module wrapper --------------------------------
class PatchEmbed3D:
    """JAX/Pallas port of the PyTorch PatchEmbed3D (norm_layer=None path)."""

    def __init__(self, img_size=224, patch_size=(2, 4, 4), in_chans=3,
                 embed_dim=96, norm_layer=None, key=None):
        self.patch_size = tuple(patch_size)
        self.patches_resolution = [img_size // patch_size[1],
                                   img_size // patch_size[2]]
        self.in_chans = in_chans
        self.embed_dim = embed_dim
        self.num_patches = self.patches_resolution[0] * self.patches_resolution[1]
        # TODO(synk): norm_layer branch (LayerNorm over embed_dim) not wired;
        # default constructor uses norm_layer=None so forward semantics match.
        assert norm_layer is None

        if key is None:
            key = jax.random.PRNGKey(0)
        kw, kb = jax.random.split(key)
        pd, ph, pw = self.patch_size
        fan_in = in_chans * pd * ph * pw
        bound = 1.0 / jnp.sqrt(fan_in)
        # PyTorch Conv3d weight layout: (embed_dim, in_chans, pd, ph, pw)
        self.weight = jax.random.uniform(
            kw, (embed_dim, in_chans, pd, ph, pw),
            minval=-bound, maxval=bound, dtype=jnp.float32)
        self.bias = jax.random.uniform(
            kb, (embed_dim,), minval=-bound, maxval=bound, dtype=jnp.float32)

    def __call__(self, x):
        return _patch_embed3d_forward(
            x, self.weight, self.bias,
            patch_size=self.patch_size, embed_dim=self.embed_dim)


# ----------------------------- reference check -------------------------------
def _reference(x, weight, bias, patch_size):
    """Pure-JAX reference: conv3d with stride == kernel == patch_size."""
    pd, ph, pw = patch_size
    N, C, D, H, W = x.shape
    pad = lambda n, p: (p - n % p) % p
    x = jnp.pad(x, ((0, 0), (0, 0), (0, pad(D, pd)), (0, pad(H, ph)), (0, pad(W, pw))))
    out = jax.lax.conv_general_dilated(
        x, weight, window_strides=(pd, ph, pw), padding="VALID",
        dimension_numbers=("NCDHW", "OIDHW", "NCDHW"))
    return out + bias.reshape(1, -1, 1, 1, 1)


if __name__ == "__main__":
    key = jax.random.PRNGKey(0)
    kx, kp = jax.random.split(key)

    # Small shapes: batch=2, channels=3, D=4, H=W=16, patch=(2,4,4), embed=96
    N, C, D, H, W = 2, 3, 4, 16, 16
    patch_size = (2, 4, 4)
    embed_dim = 96

    x = jax.random.normal(kx, (N, C, D, H, W), dtype=jnp.float32)

    mod = PatchEmbed3D(img_size=H, patch_size=patch_size, in_chans=C,
                       embed_dim=embed_dim, norm_layer=None, key=kp)

    out = jax.block_until_ready(mod(x))
    ref = jax.block_until_ready(_reference(x, mod.weight, mod.bias, patch_size))

    assert out.shape == (N, embed_dim, D // 2, H // 4, W // 4), out.shape
    assert jnp.allclose(out, ref, atol=1e-4, rtol=1e-4), \
        float(jnp.max(jnp.abs(out - ref)))

    print("KERNEL_OK")
</pallas_src>

<mosaic_0001>
module attributes {stable_mosaic.version = 11 : i64} {
  func.func @_patch_proj_kernel(%arg0: i32, %arg1: memref<64x96xf32, #tpu.memory_space<vmem>>, %arg2: memref<96x128xf32, #tpu.memory_space<vmem>>, %arg3: memref<1x128xf32, #tpu.memory_space<vmem>>, %arg4: memref<64x128xf32, #tpu.memory_space<vmem>>) attributes {dimension_semantics = [#tpu.dimension_semantics<parallel>], iteration_bounds = array<i64: 1>, scalar_prefetch = 0 : i64, scratch_operands = 0 : i64, tpu.core_type = #tpu.core_type<tc>, window_params = [{transform_indices = @transform_0, window_bounds = array<i64: 64, 96>}, {pipeline_mode = #tpu.pipeline_mode<synchronous>, transform_indices = @transform_1, window_bounds = array<i64: 96, 128>}, {pipeline_mode = #tpu.pipeline_mode<synchronous>, transform_indices = @transform_2, window_bounds = array<i64: 1, 128>}, {transform_indices = @transform_3, window_bounds = array<i64: 64, 128>}]} {
    %c0 = arith.constant 0 : index
    %c0_0 = arith.constant 0 : index
    %0 = vector.load %arg1[%c0, %c0_0] : memref<64x96xf32, #tpu.memory_space<vmem>>, vector<64x96xf32>
    %c0_1 = arith.constant 0 : index
    %c0_2 = arith.constant 0 : index
    %1 = vector.load %arg2[%c0_1, %c0_2] : memref<96x128xf32, #tpu.memory_space<vmem>>, vector<96x128xf32>
    %cst = arith.constant dense<0.000000e+00> : vector<64x128xf32>
    %2 = tpu.matmul %0, %1, %cst {dimension_numbers = #tpu.dot_dimension_numbers<[1], [0], [0], [1], [0, 0, 1, 1], [], []>} : vector<64x96xf32>, vector<96x128xf32>, vector<64x128xf32> -> vector<64x128xf32>
    %c0_3 = arith.constant 0 : index
    %c0_4 = arith.constant 0 : index
    %3 = vector.load %arg3[%c0_3, %c0_4] : memref<1x128xf32, #tpu.memory_space<vmem>>, vector<1x128xf32>
    %4 = vector.broadcast %3 : vector<1x128xf32> to vector<64x128xf32>
    %5 = arith.addf %2, %4 : vector<64x128xf32>
    %c0_5 = arith.constant 0 : index
    %c0_6 = arith.constant 0 : index
    %6 = vector.load %arg4[%c0_5, %c0_6] : memref<64x128xf32, #tpu.memory_space<vmem>>, vector<64x128xf32>
    tpu.vector_store %arg4[%c0_5, %c0_6], %5 {strides = array<i32>} : memref<64x128xf32, #tpu.memory_space<vmem>>, vector<64x128xf32>,
    return
  }
  func.func @transform_0(%arg0: i32) -> (i32, i32) {
    %c0_i32 = arith.constant 0 : i32
    %c0_i32_0 = arith.constant 0 : i32
    return %arg0, %c0_i32 : i32, i32
  }
  func.func @transform_1(%arg0: i32) -> (i32, i32) {
    %c0_i32 = arith.constant 0 : i32
    %c0_i32_0 = arith.constant 0 : i32
    %c0_i32_1 = arith.constant 0 : i32
    return %c0_i32, %c0_i32_0 : i32, i32
  }
  func.func @transform_2(%arg0: i32) -> (i32, i32) {
    %c0_i32 = arith.constant 0 : i32
    %c0_i32_0 = arith.constant 0 : i32
    %c0_i32_1 = arith.constant 0 : i32
    return %c0_i32, %c0_i32_0 : i32, i32
  }
  func.func @transform_3(%arg0: i32) -> (i32, i32) {
    %c0_i32 = arith.constant 0 : i32
    %c0_i32_0 = arith.constant 0 : i32
    return %arg0, %c0_i32 : i32, i32
  }
}

</mosaic_0001>

<bundles_post_ra>
// kernel: _patch_embed3d_forward.1
= control target key start
LH: loop header
LB: loop body
LE: loop exit
PB: predicated region body
PF: predicated region fallthrough
CT: control target
= control target key end

     0   :  { %vm42_vm0 = vcmask 785408   ;;  %s430_s0 = inlined_call_operand.vmem [shape: f32[64,96], index: 0, kind: input, shape index: {}]   ;;  %s431_s1 = inlined_call_operand.vmem [shape: f32[96,128], index: 1, kind: input, shape index: {}]   ;;  %s432_s2 = inlined_call_operand.vmem [shape: f32[1,128], index: 2, kind: input, shape index: {}]   ;;  %s433_s3 = inlined_call_operand.hbm [shape: f32[64,128], index: 3, kind: output, shape index: {}]  }
   0x1   :  { %v23_v0 = vld [vmem:[%s431_s1] sm:$0xff]  ;;  %v24_v1 = vld [vmem:[%s431_s1 + $0x8] sm:$0xff]  ;;  %v25_v2 = vld [vmem:[%s431_s1 + $0x10] sm:$0xff] }
   0x2   :  { %v261_v3 = vpack.c.bf16 %v24_v1, %v23_v0  ;;  %v26_v4 = vld [vmem:[%s431_s1 + $0x18] sm:$0xff]  ;;  %v27_v6 = vld [vmem:[%s431_s1 + $0x20] sm:$0xff]  ;;  %v28_v7 = vld [vmem:[%s431_s1 + $0x28] sm:$0xff] }
   0x3   :  { %v265_v5 = vpack.c.bf16 %v26_v4, %v25_v2  ;;  %v15_v8 = vld [vmem:[%s430_s0] sm:$0xff]  ;;  %v269_v10 = vpack.c.bf16 %v28_v7, %v27_v6  ;;  %v29_v11 = vld [vmem:[%s431_s1 + $0x30] sm:$0xff]  ;;  %v30_v12 = vld [vmem:[%s431_s1 + $0x38] sm:$0xff] }
   0x4   :  { %262 = vmatprep.subr.bf16.mxu0 %v261_v3  ;;  %285 = vmatprep.subr.bf16.mxu1 %v261_v3  ;;  %v19_v9 = vld [vmem:[%s430_s0 + $0x20] sm:$0xff] }
   0x5   :  { %264 = vmatpush3.bf16.msra.mxu0 %v261_v3  ;;  %291 = vmatpush3.bf16.msra.mxu1 %v261_v3 }
   0x6   :  { %266 = vmatprep.subr.bf16.mxu0 %v265_v5  ;;  %286 = vmatprep.subr.bf16.mxu1 %v265_v5 }
   0x7   :  { %249 = vmatprep.mubr.msk.f32.mxu0 %vm42_vm0, %v15_v8  ;;  %255 = vmatprep.mubr.msk.f32.mxu1 %vm42_vm0, %v19_v9 }
   0x8   :  { %8 = vsyncpa [#allocation3], 0  ;;  %v273_v13 = vpack.c.bf16 %v30_v12, %v29_v11  ;;  %v31_v14 = vld [vmem:[%s431_s1 + $0x40] sm:$0xff]  ;;  %v32_v15 = vld [vmem:[%s431_s1 + $0x48] sm:$0xff]  ;;  %s324_s26 = smov [#allocation2]  }
   0x9   :  { %268 = vmatpush3.bf16.msra.mxu0 %v265_v5  ;;  %292 = vmatpush3.bf16.msra.mxu1 %v265_v5  ;;  %v277_v16 = vpack.c.bf16 %v32_v15, %v31_v14  ;;  %v33_v17 = vld [vmem:[%s431_s1 + $0x50] sm:$0xff]  ;;  %v34_v18 = vld [vmem:[%s431_s1 + $0x58] sm:$0xff]  ;;  %v16_v20 = vld [vmem:[%s430_s0 + $0x8] sm:$0xff]  ;;  %s185_s27 = sshll.u32 %s324_s26, 4  ;;  %s186_s27 = int_to_ptr.vmem [resolvable:$true] %s185_s27 }
   0xa   :  { %270 = vmatprep.subr.bf16.mxu0 %v269_v10  ;;  %287 = vmatprep.subr.bf16.mxu1 %v269_v10  ;;  %v281_v19 = vpack.c.bf16 %v34_v18, %v33_v17  ;;  %v20_v21 = vld [vmem:[%s430_s0 + $0x28] sm:$0xff]  ;;  %v17_v22 = vld [vmem:[%s430_s0 + $0x10] sm:$0xff]  ;;  %v18_v24 = vld [vmem:[%s430_s0 + $0x18] sm:$0xff]  ;;  %p305_p1 = scmp.lt.s32.totalorder %s186_s27, %s186_s27 }
   0xb   :  { %v21_v23 = vld [vmem:[%s430_s0 + $0x30] sm:$0xff]  ;;  %v22_v25 = vld [vmem:[%s430_s0 + $0x38] sm:$0xff]  ;;  %v196_v26 = vld [vmem:[%s432_s2] ss:$0 sm:$0xff]  ;;  %s300_s0 = scalar_lea.vmem %s186_s27, 1024 }
   0xc   :  { %p301_p0 = scmp.ne.s32.totalorder %s186_s27, %s300_s0  ;;  %p306_p2 = scmp.lt.s32.totalorder %s300_s0, %s300_s0 }
   0xd   :  { %272 = vmatpush3.bf16.msra.mxu0 %v269_v10  ;;  %293 = vmatpush3.bf16.msra.mxu1 %v269_v10 }
   0xe   :  { %274 = vmatprep.subr.bf16.mxu0 %v273_v13  ;;  %288 = vmatprep.subr.bf16.mxu1 %v273_v13  ;;  %p307_p3 = por %p306_p2, %p305_p1 }
  0x10   :  { %p308_p4 = pnand %p307_p3, %p301_p0 }
  0x11   :  { %276 = vmatpush3.bf16.msra.mxu0 %v273_v13  ;;  %294 = vmatpush3.bf16.msra.mxu1 %v273_v13 }
  0x12   :  { %278 = vmatprep.subr.bf16.mxu0 %v277_v16  ;;  %289 = vmatprep.subr.bf16.mxu1 %v277_v16 }
  0x15   :  { %280 = vmatpush3.bf16.msra.mxu0 %v277_v16  ;;  %295 = vmatpush3.bf16.msra.mxu1 %v277_v16 }
  0x16   :  { %282 = vmatprep.subr.bf16.mxu0 %v281_v19  ;;  %290 = vmatprep.subr.bf16.mxu1 %v281_v19 }
  0x19   :  { %284 = vmatpush3.bf16.msra.mxu0 %v281_v19  ;;  %296 = vmatpush3.bf16.msra.mxu1 %v281_v19 }
  0x1c   :  { %250 = vmatmul.mubr.msk.f32.vlgmr.msra.gmra.mrb[0].mxu0 %vm42_vm0, %v16_v20  ;;  %256 = vmatmul.mubr.msk.f32.vlgmr.msra.gmra.mrb[0].mxu1 %vm42_vm0, %v20_v21 }
  0x1d   :  { %252 = vmatprep.mubr.msk.f32.mxu0 %vm42_vm0, %v17_v22  ;;  %258 = vmatprep.mubr.msk.f32.mxu1 %vm42_vm0, %v21_v23 }
  0x20   :  { %253 = vmatmul.mubr.msk.f32.gmra.mrb[2].mxu0 %vm42_vm0, %v18_v24  ;;  %259 = vmatmul.mubr.msk.f32.gmra.mrb[2].mxu1 %vm42_vm0, %v22_v25 }
  0xef   :  { %v251_v27 = vpop.f32.mrb[0].mxu0  ;;  %v257_v28 = vpop.f32.mrb[0].mxu1 }
  0xf0   :  { %v139_v29 = vadd.f32 %v251_v27, %v196_v26  ;;  %v159_v30 = vadd.f32 %v257_v28, %v196_v26  ;;  %v133_v31 = vpop.f32.mrb[1].mxu0  ;;  %v153_v32 = vpop.f32.mrb[1].mxu1 }
  0xf1   :  { %v134_v33 = vadd.f32 %v196_v26, %v133_v31  ;;  %v154_v34 = vadd.f32 %v196_v26, %v153_v32 }
  0xf2   :  { %173 = vst [vmem:[#allocation2 + $0x8] sm:$0xff] %v139_v29  ;;  %177 = vst [vmem:[#allocation2 + $0x28] sm:$0xff] %v159_v30 }
  0xf3   :  { %172 = vst [vmem:[#allocation2] sm:$0xff] %v134_v33  ;;  %176 = vst [vmem:[#allocation2 + $0x20] sm:$0xff] %v154_v34  ;;  %v254_v35 = vpop.f32.mrb[2].mxu0  ;;  %v260_v36 = vpop.f32.mrb[2].mxu1 }
  0xf4   :  { %v149_v37 = vadd.f32 %v254_v35, %v196_v26  ;;  %v169_v38 = vadd.f32 %v260_v36, %v196_v26  ;;  %v143_v39 = vpop.f32.mrb[3].mxu0  ;;  %v163_v40 = vpop.f32.mrb[3].mxu1 }
  0xf5   :  { %v144_v41 = vadd.f32 %v196_v26, %v143_v39  ;;  %v164_v42 = vadd.f32 %v196_v26, %v163_v40 }
  0xf6   :  { %175 = vst [vmem:[#allocation2 + $0x18] sm:$0xff] %v149_v37  ;;  %179 = vst [vmem:[#allocation2 + $0x38] sm:$0xff] %v169_v38 }
  0xf7   :  { %174 = vst [vmem:[#allocation2 + $0x10] sm:$0xff] %v144_v41  ;;  %178 = vst [vmem:[#allocation2 + $0x30] sm:$0xff] %v164_v42 }
  0xf8   :  { %311 = shalt.err (!%p308_p4)
}
  0xf9   :  { %s312_s29 = scalar_lea.hbm %s433_s3, 1024 }
  0xfa   :  { %p313_p5 = scmp.ne.s32.totalorder %s433_s3, %s312_s29  ;;  %p316_p6 = scmp.lt.u32.totalorder %s312_s29, %s433_s3 }
  0xfc   :  { %p318_p7 = pnand %p316_p6, %p313_p5 }
  0xfe   :  { %321 = shalt.err (!%p318_p7)
}
  0xff   :  { %s325_s7 = smov 128   ;;  %s326_s8 = smov 8  }
 0x100   :  { %191 = dma.vmem_to_hbm [thread:$0]  %s186_s27, 1024, %s433_s3, [#allocation3], %s325_s7, %s325_s7, %s326_s8  }
 0x101   :  { %322 = dma.done.wait [#allocation3], 1024  }
 0x102   :  { %323 = vsyncadd [#allocation3], 4294966272 }
 0x103   :  { %195 = vsyncpa [#allocation3], 1 }

</bundles_post_ra>
